<compile_context>
chip_gen: v6e
topology: v6e:2x2x1
jax: 0.10.0
libtpu: 0.0.40
codegen_flags: <defaults>
</compile_context>

<pallas_src>
import math

import jax
import jax.numpy as jnp
from jax.experimental import pallas as pl
from jax.experimental.pallas import tpu as pltpu

_LANE = 128


def _copy_kernel(x_ref, o_ref):
    # Identity copy of the current block; the "flatten" semantics are carried
    # entirely by the row-major layout of the flattened slab.
    o_ref[...] = x_ref[...]


def _sublane_quantum(itemsize):
    # Rows per native vreg tile: 8 for 32-bit, 16 for 16-bit, 32 for 8-bit.
    return max(8, 32 // max(1, int(itemsize)))


def _chip_tuning():
    """(block_budget_bytes, vmem_limit_bytes) per TPU generation."""
    try:
        kind = jax.devices()[0].device_kind.lower()
    except Exception:
        kind = ""
    if "v7" in kind:
        # v7x: 64 MiB physical VMEM, 3.2 TB/s -> 4 MiB blocks, 32 MiB cap.
        return 4 * 1024 * 1024, 32 * 1024 * 1024
    if "v5" in kind or "v6" in kind:
        # v5e/v6e: 128 MiB physical VMEM -> 8 MiB blocks, 64 MiB cap.
        return 8 * 1024 * 1024, 64 * 1024 * 1024
    # Unknown device: conservative defaults.
    return 4 * 1024 * 1024, 32 * 1024 * 1024


def _pick_slab(total, itemsize):
    """Pick a copy-friendly (rows, lanes) factorization of `total`.

    Prefers sublane-dense rows (multiple of the vreg sublane quantum) and a
    wide lane axis (multiple of 128) so loads/stores are unmasked.
    Returns None if `total` is not a multiple of 128.
    """
    if total % _LANE != 0:
        return None
    sub = _sublane_quantum(itemsize)
    best = None
    for lanes in (4096, 2048, 1024, 512, 256, 128):
        if total % lanes:
            continue
        rows = total // lanes
        dense = (rows >= sub) and (rows % sub == 0)
        key = (dense, lanes)
        if best is None or key > best[0]:
            best = (key, rows, lanes)
    if best is None:
        return None
    return best[1], best[2]


def _pick_row_tile(rows, row_bytes, itemsize, budget, min_steps=4):
    """Byte-budgeted row tile (multiple of the sublane quantum when tiling).

    Additionally caps the tile so the grid has at least `min_steps` steps when
    `rows` permits — with dimension_semantics=("parallel",) this lets both
    TensorCores on v7x drive HBM.
    """
    sub = _sublane_quantum(itemsize)
    rows_budget = max(1, budget // max(1, row_bytes))
    if rows <= rows_budget:
        tile = rows                                   # full dim (always legal)
    else:
        tile = max(sub, (rows_budget // sub) * sub)   # multiple of sub
    if rows >= min_steps * sub:
        cap = max(sub, (rows // min_steps // sub) * sub)
        tile = min(tile, cap)
    return min(tile, rows)


def _copy_2d(x2, budget, vmem_limit):
    """Pipelined, lane/sublane-dense identity copy of a 2-D array."""
    rows, lanes = x2.shape
    itemsize = x2.dtype.itemsize
    tile_r = _pick_row_tile(rows, lanes * itemsize, itemsize, budget)
    grid = (pl.cdiv(rows, tile_r),)
    # TODO(synk): an HBM->HBM variant (memory_space=pl.ANY + manual
    # make_async_copy over 16-64 MiB chunks) would skip the VMEM staging copy
    # entirely; kept on the BlockSpec pipeline for simplicity/robustness.
    return pl.pallas_call(
        _copy_kernel,
        out_shape=jax.ShapeDtypeStruct((rows, lanes), x2.dtype),
        grid=grid,
        in_specs=[pl.BlockSpec((tile_r, lanes), lambda i: (i, 0))],
        out_specs=pl.BlockSpec((tile_r, lanes), lambda i: (i, 0)),
        compiler_params=pltpu.CompilerParams(
            dimension_semantics=("parallel",),
            vmem_limit_bytes=vmem_limit,
        ),
    )(x2)


def _flatten_irregular(x2, budget, vmem_limit):
    """Fallback for totals that are not a multiple of 128.

    VMEM is budgeted with the lane-padded row size (ceil(f/128)*128*itemsize);
    if even a single sublane-quantum row group would blow the budget, the
    feature axis is tiled as well (128-multiple tile, 2-D grid).
    Note: the trailing dim stays f (not a multiple of 128), so writes on this
    path are masked vst.msk — acceptable for this edge case.
    """
    n, f = x2.shape
    itemsize = x2.dtype.itemsize
    sub = _sublane_quantum(itemsize)
    padded_row_bytes = pl.cdiv(f, _LANE) * _LANE * itemsize

    if padded_row_bytes * sub <= budget:
        tile_n = _pick_row_tile(n, padded_row_bytes, itemsize, budget)
        grid = (pl.cdiv(n, tile_n),)
        in_spec = pl.BlockSpec((tile_n, f), lambda i: (i, 0))
        out_spec = pl.BlockSpec((tile_n, f), lambda i: (i, 0))
        dims = ("parallel",)
    else:
        # Very wide rows: tile both axes.
        tile_n = n if n < sub else sub
        tile_f = max(_LANE, (budget // (tile_n * itemsize) // _LANE) * _LANE)
        tile_f = min(tile_f, pl.cdiv(f, _LANE) * _LANE)
        grid = (pl.cdiv(n, tile_n), pl.cdiv(f, tile_f))
        in_spec = pl.BlockSpec((tile_n, tile_f), lambda i, j: (i, j))
        out_spec = pl.BlockSpec((tile_n, tile_f), lambda i, j: (i, j))
        dims = ("parallel", "parallel")

    return pl.pallas_call(
        _copy_kernel,
        out_shape=jax.ShapeDtypeStruct((n, f), x2.dtype),
        grid=grid,
        in_specs=[in_spec],
        out_specs=out_spec,
        compiler_params=pltpu.CompilerParams(
            dimension_semantics=dims,
            vmem_limit_bytes=vmem_limit,
        ),
    )(x2)


def flatten(x, *, materialize=True):
    """Pallas equivalent of `x.view(x.size(0), -1)`.

    materialize=False returns the zero-cost metadata-only reshape (the
    production path); materialize=True runs the explicit Pallas copy.
    """
    n = x.shape[0]
    f = int(math.prod(x.shape[1:])) if x.ndim > 1 else 1

    if not materialize:
        return jnp.reshape(x, (n, f))

    budget, vmem_limit = _chip_tuning()
    itemsize = jnp.dtype(x.dtype).itemsize
    total = n * f

    slab = _pick_slab(total, itemsize)
    if slab is not None:
        rows, lanes = slab
        x2 = jnp.reshape(x, (rows, lanes))        # metadata-only
        out = _copy_2d(x2, budget, vmem_limit)
        return jnp.reshape(out, (n, f))           # metadata-only

    x2 = jnp.reshape(x, (n, f))                   # metadata-only
    return _flatten_irregular(x2, budget, vmem_limit)


if __name__ == "__main__":
    # Small NCHW input consistent with how Flatten is used inside ProtoNet
    # (after conv blocks): batch=2, channels=4, spatial=16x16.
    key = jax.random.PRNGKey(0)
    x = jax.random.normal(key, (2, 4, 16, 16), dtype=jnp.float32)

    out = flatten(x)
    out = jax.block_until_ready(out)

    # Reference: plain row-major flatten (== torch .view(N, -1)).
    ref = jnp.reshape(x, (x.shape[0], -1))
    assert out.shape == (2, 4 * 16 * 16), out.shape
    assert out.dtype == x.dtype
    assert bool(jnp.array_equal(out, ref))

    # Exercise the irregular-size fallback as well (total not % 128).
    x_irr = jax.random.normal(key, (16, 3, 5), dtype=jnp.float32)
    out_irr = jax.block_until_ready(flatten(x_irr))
    assert bool(jnp.array_equal(out_irr, jnp.reshape(x_irr, (16, 15))))

    # Zero-cost (view-only) path sanity check.
    out_view = jax.block_until_ready(flatten(x, materialize=False))
    assert bool(jnp.array_equal(out_view, ref))

    print("KERNEL_OK")
</pallas_src>

<mosaic_0001>
module attributes {stable_mosaic.version = 11 : i64} {
  func.func @_copy_kernel(%arg0: i32, %arg1: memref<8x256xf32, #tpu.memory_space<vmem>>, %arg2: memref<8x256xf32, #tpu.memory_space<vmem>>) attributes {dimension_semantics = [#tpu.dimension_semantics<parallel>], iteration_bounds = array<i64: 1>, scalar_prefetch = 0 : i64, scratch_operands = 0 : i64, tpu.core_type = #tpu.core_type<tc>, window_params = [{transform_indices = @transform_0, window_bounds = array<i64: 8, 256>}, {transform_indices = @transform_1, window_bounds = array<i64: 8, 256>}]} {
    %c0 = arith.constant 0 : index
    %c0_0 = arith.constant 0 : index
    %0 = vector.load %arg1[%c0, %c0_0] : memref<8x256xf32, #tpu.memory_space<vmem>>, vector<8x256xf32>
    %c0_1 = arith.constant 0 : index
    %c0_2 = arith.constant 0 : index
    %1 = vector.load %arg2[%c0_1, %c0_2] : memref<8x256xf32, #tpu.memory_space<vmem>>, vector<8x256xf32>
    tpu.vector_store %arg2[%c0_1, %c0_2], %0 {strides = array<i32>} : memref<8x256xf32, #tpu.memory_space<vmem>>, vector<8x256xf32>,
    return
  }
  func.func @transform_0(%arg0: i32) -> (i32, i32) {
    %c0_i32 = arith.constant 0 : i32
    %c0_i32_0 = arith.constant 0 : i32
    return %arg0, %c0_i32 : i32, i32
  }
  func.func @transform_1(%arg0: i32) -> (i32, i32) {
    %c0_i32 = arith.constant 0 : i32
    %c0_i32_0 = arith.constant 0 : i32
    return %arg0, %c0_i32 : i32, i32
  }
}

</mosaic_0001>

<bundles_post_ra>
// kernel: tpu_custom_call.1
= control target key start
LH: loop header
LB: loop body
LE: loop exit
PB: predicated region body
PF: predicated region fallthrough
CT: control target
= control target key end

     0   :  { %6 = vsyncpa [#allocation3], 0  ;;  %s104_s0 = inlined_call_operand.hbm [shape: f32[8,256], index: 0, kind: input, shape index: {}]   ;;  %s105_s1 = inlined_call_operand.hbm [shape: f32[8,256], index: 1, kind: output, shape index: {}]  }
   0x1   :  { %7 = vsyncpa [#allocation4], 0  ;;  %s86_s6 = smov [#allocation2]  }
   0x2   :  { %s14_s7 = sshll.u32 %s86_s6, 4  ;;  %s15_s7 = int_to_ptr.vmem [resolvable:$true] %s14_s7 }
   0x3   :  { %s50_s8 = scalar_lea.vmem %s15_s7, 256  ;;  %p55_p1 = scmp.lt.s32.totalorder %s15_s7, %s15_s7 }
   0x4   :  { %p51_p0 = scmp.ne.s32.totalorder %s15_s7, %s50_s8  ;;  %p56_p2 = scmp.lt.s32.totalorder %s50_s8, %s50_s8 }
   0x6   :  { %p57_p3 = por %p56_p2, %p55_p1 }
   0x8   :  { %p58_p4 = pnand %p57_p3, %p51_p0 }
   0xa   :  { %61 = shalt.err (!%p58_p4)
}
   0xb   :  { %17 = dma.hbm_to_vmem [thread:$0]  %s104_s0, 256, %s15_s7, [#allocation3]  }
   0xc   :  { %82 = dma.done.wait [#allocation3], 256  }
   0xd   :  { %83 = vsyncadd [#allocation3], 4294967040  ;;  %s87_s11 = smov [#allocation5]   ;;  %v21_v0 = vld [vmem:[#allocation2] sm:$0xff]  ;;  %v22_v1 = vld [vmem:[#allocation2 + $0x8] sm:$0xff] }
   0xe   :  { %s31_s12 = sshll.u32 %s87_s11, 4  ;;  %23 = vst [vmem:[#allocation5] sm:$0xff] %v21_v0  ;;  %24 = vst [vmem:[#allocation5 + $0x8] sm:$0xff] %v22_v1  ;;  %s32_s12 = int_to_ptr.vmem [resolvable:$true] %s31_s12 }
   0xf   :  { %s62_s13 = scalar_lea.vmem %s32_s12, 256  ;;  %p67_p6 = scmp.lt.s32.totalorder %s32_s12, %s32_s12 }
  0x10   :  { %p63_p5 = scmp.ne.s32.totalorder %s32_s12, %s62_s13  ;;  %p68_p7 = scmp.lt.s32.totalorder %s62_s13, %s62_s13 }
  0x12   :  { %p69_p8 = por %p68_p7, %p67_p6 }
  0x14   :  { %p70_p9 = pnand %p69_p8, %p63_p5 }
  0x16   :  { %73 = shalt.err (!%p70_p9)
}
  0x17   :  { %34 = dma.vmem_to_hbm [thread:$0]  %s32_s12, 256, %s105_s1, [#allocation4]  }
  0x18   :  { %84 = dma.done.wait [#allocation4], 256  }
  0x19   :  { %85 = vsyncadd [#allocation4], 4294967040 }
  0x1a   :  { %38 = vsyncpa [#allocation3], 1 }
  0x1b   :  { %39 = vsyncpa [#allocation4], 1 }

</bundles_post_ra>
